<compile_context>
chip_gen: v7x
topology: tpu7x:2x2x1
jax: 0.10.0
libtpu: 0.0.40
codegen_flags: <defaults>
</compile_context>

<pallas_src>
import functools

import jax
import jax.numpy as jnp
import numpy as np
from jax import lax
from jax.experimental import pallas as pl
from jax.experimental.pallas import tpu as pltpu


@functools.lru_cache(maxsize=None)
def _roll_is_numpy_like():
    """One-time probe of pltpu.roll's rotation direction on this backend.

    Guards the lane-alignment math in the kernel against any rotate-direction
    convention difference across jax versions; compiled once, 4 KiB of work.
    """
    def probe(x_ref, o_ref):
        o_ref[...] = pltpu.roll(x_ref[...], 1, axis=1)

    x = jnp.broadcast_to(lax.iota(jnp.float32, 128), (8, 128))
    y = pl.pallas_call(
        probe, out_shape=jax.ShapeDtypeStruct((8, 128), jnp.float32))(x)
    # numpy semantics: result[j] = x[j - shift]  ->  y[0, 1] == x[0, 0] == 0
    return bool(np.asarray(y)[0, 1] == 0.0)


def _default_num_blocks():
    """2 M-blocks only on dual-TensorCore chips (v7x); 1 elsewhere.

    On single-TC v5e/v6e a multi-step "parallel" grid is just a serial loop
    that adds ~0.35-0.7 us of per-step pipeline overhead to a us-scale kernel.
    """
    try:
        kind = jax.devices()[0].device_kind.lower()
    except Exception:
        return 1
    return 2 if ("v7" in kind or "7x" in kind) else 1


def _convlstm_kernel(patch_ref, w_ref, b_ref, cprev_ref, out_ref,
                     *, HID, shift_i, shift_cell):
    # patch_ref: (TM, KP)      bf16 im2col patches (rows = flattened N*H*W)
    # w_ref    : (KP, 4*HID)   bf16 conv weights; tanh-gate cols pre-scaled by 2
    # b_ref    : (1, 4*HID)    f32 bias; tanh-gate cols pre-scaled by 2
    # cprev_ref: (TM, 4*HID)   f32; c_prev in lanes [HID, 2*HID), zeros elsewhere
    # out_ref  : (TM, 4*HID)   f32; [0,HID)=hidden, [HID,2*HID)=cell, rest 0
    gates = jnp.dot(patch_ref[...], w_ref[...],
                    preferred_element_type=jnp.float32) + b_ref[...]

    # ONE transcendental pass over all 4*HID lanes. The cell-gate columns were
    # pre-scaled by 2 in the wrapper, so tanh(z) = 2*sigmoid(2z) - 1 is a cheap
    # VPU fixup rather than a second EUP pass.
    col = lax.broadcasted_iota(jnp.int32, gates.shape, 1)
    s = jax.nn.sigmoid(gates)
    act = jnp.where(col < 3 * HID, s, 2.0 * s - 1.0)
    # act lanes: [0,H)=in_gate  [H,2H)=remember  [2H,3H)=out_gate  [3H,4H)=cell_gate

    # Lane-align operands with XLU rotations (off the VPU/EUP critical path)
    # and keep the tail math full-width -> a single unmasked 128-lane store.
    a_i = pltpu.roll(act, shift_i, axis=1)     # lanes [H,2H) = in_gate
    a_og = pltpu.roll(act, 2 * HID, axis=1)    # [0,H)=out_gate, [H,2H)=cell_gate
    cell_fw = act * cprev_ref[...] + a_i * a_og          # lanes [H,2H) = cell
    cell_lo = pltpu.roll(cell_fw, shift_cell, axis=1)    # lanes [0,H)  = cell
    hidden_fw = a_og * jnp.tanh(cell_lo)                 # lanes [0,H)  = hidden

    out_ref[...] = jnp.where(col < HID, hidden_fw,
                             jnp.where(col < 2 * HID, cell_fw, 0.0))


def convlstm_cell_pallas(x, h_prev, c_prev, weight_hwio, bias, padding,
                         *, num_blocks=None):
    """x, h_prev, c_prev: NHWC float32. weight_hwio: (KH, KW, Cin+HID, 4*HID)."""
    N, H, W, Cin = x.shape
    HID = h_prev.shape[-1]
    KH, KW, C, O = weight_hwio.shape
    assert C == Cin + HID and O == 4 * HID
    # The wrapper-side im2col below is only valid for stride=1, dilation=1,
    # "same" padding (correctness concern from review).
    assert padding == (KH - 1) // 2 == (KW - 1) // 2, (
        "convlstm_cell_pallas requires padding == (kernel_size - 1) // 2")

    K = KH * KW * C
    KP = ((K + 127) // 128) * 128          # lane-align the contraction dim
    M = N * H * W

    # --- wrapper-side im2col (plain XLA), bf16 BEFORE the 9x tap duplication --
    stacked = jnp.concatenate([x, h_prev], axis=-1).astype(jnp.bfloat16)
    xpad = jnp.pad(stacked,
                   ((0, 0), (padding, padding), (padding, padding), (0, 0)))
    # Tap ordering (kh-major, then kw, then c) matches
    # weight_hwio.reshape(KH*KW*C, 4*HID) row ordering; a trailing zero tap
    # pads K -> KP (zeros contribute nothing to the dot).
    taps = [xpad[:, kh:kh + H, kw:kw + W, :]
            for kh in range(KH) for kw in range(KW)]
    if KP > K:
        taps.append(jnp.zeros((N, H, W, KP - K), jnp.bfloat16))
    patches = jnp.concatenate(taps, axis=-1).reshape(M, KP)

    # tanh(z) = 2*sigmoid(2z) - 1: pre-scale the cell-gate columns by 2 (in
    # f32, before the bf16 cast) so the kernel needs only one sigmoid pass.
    col_scale = jnp.concatenate([jnp.ones((3 * HID,), jnp.float32),
                                 jnp.full((HID,), 2.0, jnp.float32)])
    w2d = weight_hwio.reshape(K, O) * col_scale[None, :]
    w2d = jnp.pad(w2d, ((0, KP - K), (0, 0))).astype(jnp.bfloat16)
    b2d = (bias * col_scale).reshape(1, O).astype(jnp.float32)
    # c_prev placed in lanes [HID, 2*HID) of a 4*HID-wide slab (lane-aligned
    # with the remember gate), zeros elsewhere.
    cprev_slab = jnp.pad(c_prev.astype(jnp.float32).reshape(M, HID),
                         ((0, 0), (HID, 2 * HID)))

    # --- grid: 1 block on single-TC chips, 2 "parallel" blocks on v7x ---------
    if num_blocks is None:
        num_blocks = _default_num_blocks()
    if num_blocks > 1 and M % num_blocks == 0 and (M // num_blocks) % 8 == 0:
        TM = M // num_blocks
    else:
        TM = M
    G = M // TM

    # pltpu.roll shift selection, robust to rotation-direction convention.
    if _roll_is_numpy_like():
        shift_i, shift_cell = HID, 3 * HID
    else:
        shift_i, shift_cell = 3 * HID, HID

    kernel = functools.partial(_convlstm_kernel, HID=HID,
                               shift_i=shift_i, shift_cell=shift_cell)

    out = pl.pallas_call(
        kernel,
        out_shape=jax.ShapeDtypeStruct((M, O), jnp.float32),
        grid=(G,),
        in_specs=[
            pl.BlockSpec((TM, KP), lambda m: (m, 0)),     # im2col patches
            pl.BlockSpec((KP, O), lambda m: (0, 0)),      # weights (shared)
            pl.BlockSpec((1, O), lambda m: (0, 0)),       # bias (shared)
            pl.BlockSpec((TM, O), lambda m: (m, 0)),      # c_prev slab
        ],
        out_specs=pl.BlockSpec((TM, O), lambda m: (m, 0)),
        # Working set is ~1 MiB per block: far under every generation's scoped
        # VMEM default (v7x: 32 MiB of 64 MiB physical), so no vmem override.
        compiler_params=pltpu.CompilerParams(
            dimension_semantics=("parallel",)),
    )(patches, w2d, b2d, cprev_slab)

    hidden = out[:, :HID].reshape(N, H, W, HID)
    cell = out[:, HID:2 * HID].reshape(N, H, W, HID)
    return hidden, cell


def convlstm_cell_ref(x, h_prev, c_prev, weight_hwio, bias, padding):
    """Pure-JAX f32 reference mirroring the PyTorch forward (NHWC)."""
    stacked = jnp.concatenate([x, h_prev], axis=-1)
    gates = lax.conv_general_dilated(
        stacked, weight_hwio, (1, 1),
        [(padding, padding), (padding, padding)],
        dimension_numbers=("NHWC", "HWIO", "NHWC")) + bias
    HID = h_prev.shape[-1]
    i, r, o, g = (gates[..., 0 * HID:1 * HID], gates[..., 1 * HID:2 * HID],
                  gates[..., 2 * HID:3 * HID], gates[..., 3 * HID:4 * HID])
    i, r, o, g = jax.nn.sigmoid(i), jax.nn.sigmoid(r), jax.nn.sigmoid(o), jnp.tanh(g)
    cell = r * c_prev + i * g
    hidden = o * jnp.tanh(cell)
    return hidden, cell


if __name__ == "__main__":
    # Module hyper-params (matching ConvLSTMCell.__init__ shapes)
    input_size, hidden_size, kernel_size, padding = 4, 32, 3, 1
    N, H, W = 2, 16, 16

    key = jax.random.PRNGKey(0)
    kx, kh, kc, kw_, kb = jax.random.split(key, 5)

    # Deterministic parameter init (xavier_normal_ gain=0.02 on the conv
    # weight, PyTorch-style small uniform on the bias).
    Cin_total = input_size + hidden_size
    out_ch = 4 * hidden_size
    fan_in = Cin_total * kernel_size * kernel_size
    fan_out = out_ch * kernel_size * kernel_size
    std = 0.02 * np.sqrt(2.0 / (fan_in + fan_out))
    # PyTorch weight layout (O, I, KH, KW) -> HWIO (KH, KW, I, O)
    w_oikk = std * jax.random.normal(
        kw_, (out_ch, Cin_total, kernel_size, kernel_size), jnp.float32)
    weight_hwio = jnp.transpose(w_oikk, (2, 3, 1, 0))
    bound = 1.0 / np.sqrt(fan_in)
    bias = jax.random.uniform(kb, (out_ch,), jnp.float32, -bound, bound)

    # Inputs (NHWC)
    x = jax.random.normal(kx, (N, H, W, input_size), jnp.float32)
    h_prev = jax.random.normal(kh, (N, H, W, hidden_size), jnp.float32)
    c_prev = jax.random.normal(kc, (N, H, W, hidden_size), jnp.float32)

    hidden, cell = convlstm_cell_pallas(x, h_prev, c_prev,
                                        weight_hwio, bias, padding)
    jax.block_until_ready((hidden, cell))

    h_ref, c_ref = convlstm_cell_ref(x, h_prev, c_prev,
                                     weight_hwio, bias, padding)
    np.testing.assert_allclose(np.asarray(hidden), np.asarray(h_ref),
                               rtol=2e-3, atol=2e-3)
    np.testing.assert_allclose(np.asarray(cell), np.asarray(c_ref),
                               rtol=2e-3, atol=2e-3)

    print("KERNEL_OK")
</pallas_src>

<mosaic_0001>
module attributes {stable_mosaic.version = 11 : i64} {
  func.func @probe(%arg0: memref<8x128xf32, #tpu.memory_space<vmem>>, %arg1: memref<8x128xf32, #tpu.memory_space<vmem>>) attributes {dimension_semantics = [], scalar_prefetch = 0 : i64, scratch_operands = 0 : i64, tpu.core_type = #tpu.core_type<tc>} {
    %c0 = arith.constant 0 : index
    %c0_0 = arith.constant 0 : index
    %0 = vector.load %arg0[%c0, %c0_0] : memref<8x128xf32, #tpu.memory_space<vmem>>, vector<8x128xf32>
    %c1_i32 = arith.constant 1 : i32
    %1 = tpu.dynamic_rotate %0 by %c1_i32 dim 1 : vector<8x128xf32>, i32 -> vector<8x128xf32>
    %c0_1 = arith.constant 0 : index
    %c0_2 = arith.constant 0 : index
    %2 = vector.load %arg1[%c0_1, %c0_2] : memref<8x128xf32, #tpu.memory_space<vmem>>, vector<8x128xf32>
    tpu.vector_store %arg1[%c0_1, %c0_2], %1 {strides = array<i32>} : memref<8x128xf32, #tpu.memory_space<vmem>>, vector<8x128xf32>,
    return
  }
}

</mosaic_0001>

<bundles_post_ra>
// kernel: tpu_custom_call.1
= control target key start
LH: loop header
LB: loop body
LE: loop exit
PB: predicated region body
PF: predicated region fallthrough
CT: control target
= control target key end

     0   :  { %6 = vsyncpa [#allocation3], 0  ;;  %s128_s0 = inlined_call_operand.hbm [shape: f32[8,128], index: 0, kind: input, shape index: {}]   ;;  %s129_s1 = inlined_call_operand.hbm [shape: f32[8,128], index: 1, kind: output, shape index: {}]  }
   0x1   :  { %7 = vsyncpa [#allocation4], 0  ;;  %s91_s6 = smov [#allocation2]   ;;  %s43_s10 = scalar_lea.hbm %s128_s0, 128 }
   0x2   :  { %s14_s7 = sshll.u32 %s91_s6, 4  ;;  %p44_p0 = scmp.ne.s32.totalorder %s128_s0, %s43_s10  ;;  %s15_s7 = int_to_ptr.vmem [resolvable:$true] %s14_s7 }
   0x3   :  { %p47_p1 = scmp.lt.u32.totalorder %s43_s10, %s128_s0 }
   0x5   :  { %p49_p2 = pnand %p47_p1, %p44_p0 }
   0x7   :  { %52 = shalt.err (!%p49_p2)
}
   0x8   :  { %s53_s15 = scalar_lea.vmem %s15_s7, 128  ;;  %p58_p4 = scmp.lt.s32.totalorder %s15_s7, %s15_s7 }
   0x9   :  { %p54_p3 = scmp.ne.s32.totalorder %s15_s7, %s53_s15  ;;  %p59_p5 = scmp.lt.s32.totalorder %s53_s15, %s53_s15 }
   0xb   :  { %p60_p6 = por %p59_p5, %p58_p4 }
   0xd   :  { %p61_p7 = pnand %p60_p6, %p54_p3 }
   0xf   :  { %64 = shalt.err (!%p61_p7)
}
  0x10   :  { %17 = dma.hbm_to_vmem [thread:$0]  %s128_s0, 128, %s15_s7, [#allocation3]  }
  0x11   :  { %87 = dma.done.wait [#allocation3], 128  }
  0x12   :  { %88 = vsyncadd [#allocation3], 4294967168  ;;  %v21_v0 = vld [vmem:[#allocation2] sm:$0xff]  ;;  %s92_s18 = smov 1   ;;  %s93_s19 = smov [#allocation5]  }
  0x13   :  { %22 = vrot.lane.b32.xlu0 %v21_v0, %s92_s18  ;;  %s31_s20 = sshll.u32 %s93_s19, 4  ;;  %s32_s20 = int_to_ptr.vmem [resolvable:$true] %s31_s20 }
  0x14   :  { %s65_s21 = scalar_lea.vmem %s32_s20, 128  ;;  %p70_p9 = scmp.lt.s32.totalorder %s32_s20, %s32_s20 }
  0x15   :  { %p66_p8 = scmp.ne.s32.totalorder %s32_s20, %s65_s21  ;;  %p71_p10 = scmp.lt.s32.totalorder %s65_s21, %s65_s21 }
  0x17   :  { %p72_p11 = por %p71_p10, %p70_p9 }
  0x19   :  { %p73_p12 = pnand %p72_p11, %p66_p8 }
  0x85   :  { %v23_v1 = vpop.permute.xlu0 %22 }
  0x86   :  { %24 = vst [vmem:[#allocation5] sm:$0xff] %v23_v1 }
  0x87   :  { %76 = shalt.err (!%p73_p12)
}
  0x88   :  { %s77_s0 = scalar_lea.hbm %s129_s1, 128 }
  0x89   :  { %p78_p13 = scmp.ne.s32.totalorder %s129_s1, %s77_s0  ;;  %p81_p0 = scmp.lt.u32.totalorder %s77_s0, %s129_s1 }
  0x8b   :  { %p83_p1 = pnand %p81_p0, %p78_p13 }
  0x8d   :  { %86 = shalt.err (!%p83_p1)
}
  0x8e   :  { %34 = dma.vmem_to_hbm [thread:$0]  %s32_s20, 128, %s129_s1, [#allocation4]  }
  0x8f   :  { %89 = dma.done.wait [#allocation4], 128  }
  0x90   :  { %90 = vsyncadd [#allocation4], 4294967168 }
  0x91   :  { %38 = vsyncpa [#allocation3], 1 }
  0x92   :  { %39 = vsyncpa [#allocation4], 1 }

</bundles_post_ra>
